<compile_context>
chip_gen: v7x
topology: tpu7x:2x2x1
jax: 0.10.0
libtpu: 0.0.40
codegen_flags: <defaults>
</compile_context>

<pallas_src>
import math

import jax
import jax.numpy as jnp
from jax.experimental import pallas as pl
from jax.experimental.pallas import tpu as pltpu


def _scaled_sinusoidal_kernel(scale_ref, tab_ref, o_ref):
    # o_ref block: (tile_s, embed_dim) -- leading size-1 dim squeezed away.
    tile_s, _ = o_ref.shape
    seq_start = pl.program_id(0) * tile_s

    # (tile_s, 1) absolute-position column; lane broadcast happens in the mul.
    pos = (
        jax.lax.broadcasted_iota(jnp.int32, (tile_s, 1), 0) + seq_start
    ).astype(jnp.float32)

    tab = tab_ref[...]          # (2, embed_dim) f32
    inv_freq = tab[0:1, :]      # per-lane pair frequency
    phase = tab[1:2, :]         # 0 (even lane) or pi/2 (odd lane)

    # cos(x) = sin(x + pi/2): one sin per element instead of sin+cos+select.
    # NOTE: jnp.sin lowers to a VPU range-reduction + polynomial (not one EUP
    # push), so this kernel is VALU-bound once HBM stops binding.
    # TODO(synk): on v7x, offload `pos * inv_freq + phase` to the idle MXU as a
    # K=2 f32 matmul once a bundle dump confirms the VALU slot binds.
    pe = jnp.sin(pos * inv_freq + phase)

    if jnp.dtype(o_ref.dtype).itemsize < 4:
        # Narrow output (e.g. bf16): scale in the output dtype so the VPU packs
        # 2 elems/lane (v6e/v7x). Default f32 path below is used on v5e.
        o_ref[...] = pe.astype(o_ref.dtype) * scale_ref[0].astype(o_ref.dtype)
    else:
        o_ref[...] = (scale_ref[0] * pe).astype(o_ref.dtype)


def _choose_tile_s(seq_len, embed_dim, out_dtype):
    """VMEM- and dtype-aware sequence tile size (rows per grid step)."""
    itemsize = jnp.dtype(out_dtype).itemsize
    align = 8 if itemsize >= 4 else 16                 # sublane packing
    row_bytes = max(embed_dim * itemsize, 1)
    # ~4 MiB per output block => ~8 MiB double-buffered: fits v5e's 16 MiB
    # scoped-VMEM default, ample headroom on v7x's 64 MiB physical VMEM, and
    # large enough to amortize per-grid-step overhead.
    budget = 4 * 1024 * 1024
    max_rows = max(align, (budget // row_bytes) // align * align)
    seq_rounded = pl.cdiv(seq_len, align) * align
    tile_s = min(max_rows, seq_rounded)
    # Prefer >= 2 (roughly balanced) tiles so dimension_semantics=("parallel",)
    # can split the grid across both TensorCores on v7x.
    if tile_s >= seq_rounded and seq_rounded >= 2 * align:
        tile_s = pl.cdiv(seq_rounded // 2, align) * align
    return tile_s


def scaled_sinusoidal(
    input_ids, embedding_dim, scale_factor, *, tile_s=None, out_dtype=jnp.float32
):
    """Pallas equivalent of ScaledSinosoidal.forward.

    Args:
      input_ids: [batch, seq_len] int array (only the static seq_len is used).
      embedding_dim: int, embedding dimension D (must be even).
      scale_factor: shape-(1,) float32 array (the learned scale parameter).
      tile_s: optional override for rows per grid step.
      out_dtype: output dtype (f32 default; bf16 halves HBM writeback traffic).
    Returns:
      [1, seq_len, embedding_dim] array of out_dtype.
    """
    assert embedding_dim % 2 == 0, "embedding_dim must be even (sin/cos pairs)"
    seq_len = input_ids.shape[1]

    if tile_s is None:
        tile_s = _choose_tile_s(seq_len, embedding_dim, out_dtype)
    grid = (pl.cdiv(seq_len, tile_s),)   # ragged last block: OOB writes dropped

    # Lane-constant tables hoisted out of the kernel, merged into one (2, D)
    # resident VMEM block (constant block index -> no re-DMA across steps).
    d_idx = jnp.arange(embedding_dim, dtype=jnp.int32)
    pair = (d_idx & ~1).astype(jnp.float32)                      # 2 * (d // 2)
    inv_freq = jnp.exp(pair * (-math.log(10000.0) / embedding_dim))
    phase = (d_idx & 1).astype(jnp.float32) * (math.pi / 2.0)
    tab = jnp.stack([inv_freq, phase], axis=0)                   # (2, D) f32

    return pl.pallas_call(
        _scaled_sinusoidal_kernel,
        out_shape=jax.ShapeDtypeStruct((1, seq_len, embedding_dim), out_dtype),
        grid_spec=pltpu.PrefetchScalarGridSpec(
            num_scalar_prefetch=0,
            grid=grid,
            in_specs=[
                pl.BlockSpec(memory_space=pltpu.SMEM),                 # scale (1,)
                pl.BlockSpec((2, embedding_dim), lambda i: (0, 0)),    # tables
            ],
            out_specs=pl.BlockSpec(
                (pl.Squeezed(), tile_s, embedding_dim), lambda i: (0, i, 0)
            ),
        ),
        compiler_params=pltpu.CompilerParams(
            dimension_semantics=("parallel",)   # disjoint seq tiles -> 2 TCs on v7x
        ),
    )(scale_factor, tab)


def _reference(seq_len, embedding_dim, scale_factor):
    """Pure-JAX reference matching the PyTorch module exactly."""
    position = jnp.arange(seq_len, dtype=jnp.float32)[:, None]
    div_term = jnp.exp(
        jnp.arange(0, embedding_dim, 2, dtype=jnp.float32)
        * (-math.log(10000.0) / embedding_dim)
    )
    pe = jnp.zeros((seq_len, embedding_dim), jnp.float32)
    pe = pe.at[:, 0::2].set(jnp.sin(position * div_term))
    pe = pe.at[:, 1::2].set(jnp.cos(position * div_term))
    return scale_factor[0] * pe[None, :, :]


if __name__ == "__main__":
    key = jax.random.PRNGKey(0)

    # Primary small-shape check (matches the module's expected usage).
    batch, seq_len, embedding_dim = 2, 8, 32
    input_ids = jax.random.randint(key, (batch, seq_len), 0, 1000, dtype=jnp.int32)
    # Deterministic parameter init, identical to the module's __init__.
    scale_factor = jnp.array([1.0 / math.sqrt(embedding_dim)], dtype=jnp.float32)

    out = scaled_sinusoidal(input_ids, embedding_dim, scale_factor)
    out = jax.block_until_ready(out)
    ref = _reference(seq_len, embedding_dim, scale_factor)
    assert out.shape == (1, seq_len, embedding_dim)
    assert jnp.allclose(out, ref, atol=1e-5, rtol=1e-5), "mismatch vs reference"

    # Secondary check: awkward shapes (ragged last seq block, non-128 lane dim,
    # >= 2 grid tiles).
    seq_len2, embedding_dim2 = 20, 48
    input_ids2 = jax.random.randint(key, (batch, seq_len2), 0, 1000, dtype=jnp.int32)
    scale_factor2 = jnp.array([1.0 / math.sqrt(embedding_dim2)], dtype=jnp.float32)
    out2 = scaled_sinusoidal(input_ids2, embedding_dim2, scale_factor2)
    out2 = jax.block_until_ready(out2)
    ref2 = _reference(seq_len2, embedding_dim2, scale_factor2)
    assert out2.shape == (1, seq_len2, embedding_dim2)
    assert jnp.allclose(out2, ref2, atol=1e-5, rtol=1e-5), "mismatch vs reference (ragged)"

    print("KERNEL_OK")
</pallas_src>

<mosaic_0001>
module attributes {stable_mosaic.version = 11 : i64} {
  func.func @_scaled_sinusoidal_kernel(%arg0: i32, %arg1: memref<1xf32, #tpu.memory_space<smem>>, %arg2: memref<2x32xf32, #tpu.memory_space<vmem>>, %arg3: memref<1x8x32xf32, #tpu.memory_space<vmem>>) attributes {dimension_semantics = [#tpu.dimension_semantics<parallel>], iteration_bounds = array<i64: 1>, scalar_prefetch = 0 : i64, scratch_operands = 0 : i64, tpu.core_type = #tpu.core_type<tc>, window_params = [{transform_indices = @transform_0, window_bounds = array<i64: 1>}, {pipeline_mode = #tpu.pipeline_mode<synchronous>, transform_indices = @transform_1, window_bounds = array<i64: 2, 32>}, {transform_indices = @transform_2, window_bounds = array<i64: 1, 8, 32>}]} {
    %c8_i32 = arith.constant 8 : i32
    %0 = arith.muli %arg0, %c8_i32 : i32
    %1 = tpu.iota {dimensions = array<i32: 0>} : vector<8x1xi32>
    %2 = vector.broadcast %0 : i32 to vector<8x1xi32>
    %3 = arith.addi %1, %2 : vector<8x1xi32>
    %4 = arith.sitofp %3 : vector<8x1xi32> to vector<8x1xf32>
    %c0 = arith.constant 0 : index
    %c0_0 = arith.constant 0 : index
    %5 = vector.load %arg2[%c0, %c0_0] : memref<2x32xf32, #tpu.memory_space<vmem>>, vector<2x32xf32>
    %6 = vector.extract_strided_slice %5 {offsets = [0, 0], sizes = [1, 32], strides = [1, 1]} : vector<2x32xf32> to vector<1x32xf32>
    %7 = vector.extract_strided_slice %5 {offsets = [1, 0], sizes = [1, 32], strides = [1, 1]} : vector<2x32xf32> to vector<1x32xf32>
    %8 = vector.broadcast %4 : vector<8x1xf32> to vector<8x32xf32>
    %9 = vector.broadcast %6 : vector<1x32xf32> to vector<8x32xf32>
    %10 = arith.mulf %8, %9 : vector<8x32xf32>
    %11 = vector.broadcast %7 : vector<1x32xf32> to vector<8x32xf32>
    %12 = arith.addf %10, %11 : vector<8x32xf32>
    %13 = math.sin %12 : vector<8x32xf32>
    %c0_1 = arith.constant 0 : index
    %14 = memref.load %arg1[%c0_1] : memref<1xf32, #tpu.memory_space<smem>>
    %15 = vector.broadcast %14 : f32 to vector<8x32xf32>
    %16 = arith.mulf %15, %13 : vector<8x32xf32>
    %c0_2 = arith.constant 0 : index
    %c0_3 = arith.constant 0 : index
    %c0_4 = arith.constant 0 : index
    %17 = vector.load %arg3[%c0_2, %c0_3, %c0_4] : memref<1x8x32xf32, #tpu.memory_space<vmem>>, vector<1x8x32xf32>
    %18 = vector.shape_cast %17 : vector<1x8x32xf32> to vector<8x32xf32>
    %19 = vector.shape_cast %16 : vector<8x32xf32> to vector<1x8x32xf32>
    tpu.vector_store %arg3[%c0_2, %c0_3, %c0_4], %19 {strides = array<i32>} : memref<1x8x32xf32, #tpu.memory_space<vmem>>, vector<1x8x32xf32>,
    return
  }
  func.func @transform_0(%arg0: i32) -> i32 {
    %c0_i32 = arith.constant 0 : i32
    %c0_i32_0 = arith.constant 0 : i32
    return %c0_i32 : i32
  }
  func.func @transform_1(%arg0: i32) -> (i32, i32) {
    %c0_i32 = arith.constant 0 : i32
    %c0_i32_0 = arith.constant 0 : i32
    %c0_i32_1 = arith.constant 0 : i32
    return %c0_i32, %c0_i32_0 : i32, i32
  }
  func.func @transform_2(%arg0: i32) -> (i32, i32, i32) {
    %c0_i32 = arith.constant 0 : i32
    %c0_i32_0 = arith.constant 0 : i32
    %c0_i32_1 = arith.constant 0 : i32
    return %c0_i32, %arg0, %c0_i32_0 : i32, i32, i32
  }
}

</mosaic_0001>

<bundles_post_ra>
// kernel: tpu_custom_call.1
= control target key start
LH: loop header
LB: loop body
LE: loop exit
PB: predicated region body
PF: predicated region fallthrough
CT: control target
= control target key end

     0   :  { %v14_v0 = vlaneseq  ;;  %s257_s0 = inlined_call_operand.<no memory space> [shape: f32[1], index: 0, kind: input, shape index: {}]   ;;  %s258_s1 = inlined_call_operand.vmem [shape: f32[2,32], index: 1, kind: input, shape index: {}]   ;;  %s259_s2 = inlined_call_operand.hbm [shape: f32[1,8,32], index: 2, kind: output, shape index: {}]  }
   0x2   :  { %v15_v1 = vshrl.u32 %v14_v0, 7 }
   0x3   :  { %8 = vsyncpa [#allocation4], 0  ;;  %v19_v2 = vld [vmem:[%s258_s1] sm:$0x3]  ;;  %v196_v21 = vmov 683565275  }
   0x4   :  { %v18_v3 = vcvt.s32.f32 %v15_v1  ;;  %v22_v4 = vsub.s32 0, %v15_v1  ;;  %v27_v5 = vsub.s32 1, %v15_v1  ;;  %v197_v23 = vmov 2475754826   ;;  %s202_s12 = smov [#allocation3]  }
   0x5   :  { %v198_v25 = vmov 2131351028   ;;  %v199_v27 = vmov 2102212464   ;;  %v200_v29 = vmov 920167782  }
   0x6   :  { %v23_v6 = vrot.slane %v19_v2, %v22_v4  ;;  %v28_v7 = vrot.slane %v19_v2, %v27_v5  ;;  %v201_v36 = vmov 1326507024   ;;  %s145_s13 = sshll.u32 %s202_s12, 4  ;;  %vm137_vm13 = vcmask 261120   ;;  %s146_s13 = int_to_ptr.vmem [resolvable:$true] %s145_s13 }
   0x7   :  { %s172_s14 = scalar_lea.vmem %s146_s13, 128  ;;  %p177_p1 = scmp.lt.s32.totalorder %s146_s13, %s146_s13 }
   0x8   :  { %v24_v8 = vmul.f32 %v23_v6, %v18_v3  ;;  %p173_p0 = scmp.ne.s32.totalorder %s146_s13, %s172_s14  ;;  %p178_p2 = scmp.lt.s32.totalorder %s172_s14, %s172_s14 }
   0xa   :  { %v221_v9 = vadd.f32 %v28_v7, %v24_v8  ;;  %p179_p3 = por %p178_p2, %p177_p1 }
   0xc   :  { %v33_v10 = vand.u32 2139095040, %v221_v9  ;;  %v30_v12 = vand.u32 2147483647, %v221_v9  ;;  %vm32_vm7 = vcmp.lt.s32.totalorder %v221_v9, 0  ;;  %vm122_vm12 = vweird.f32 %v221_v9  ;;  %p180_p4 = pnand %p179_p3, %p173_p0 }
   0xe   :  { %v34_v11 = vshrl.u32 %v33_v10, 23  ;;  %v37_v15 = vand.u32 8388607, %v30_v12  ;;  %vm31_vm8 = vcmp.le.f32.partialorder %v30_v12, 0.7853982 }
  0x10   :  { %v153_v13 = vadd.s32 4294967169, %v34_v11  ;;  %v38_v18 = vor.u32 8388608, %v37_v15 }
  0x12   :  { %v40_v14 = vadd.s32 1, %v153_v13  ;;  %v78_v38 = vshll.u32 %v38_v18, 8 }
  0x14   :  { %vm41_vm0 = vcmp.gt.s32.totalorder %v40_v14, 0 }
  0x15   :  { %v42_v16 = vsel %vm41_vm0, %v40_v14, 0 }
  0x16   :  { %v44_v17 = vand.u32 31, %v42_v16  ;;  %v43_v19 = vshrl.u32 %v42_v16, 5 }
  0x18   :  { %v45_v20 = vsub.s32 32, %v44_v17  ;;  %v47_v22 = vshll.u32 %v196_v21, %v44_v17  ;;  %v50_v24 = vshll.u32 %v197_v23, %v44_v17  ;;  %v53_v26 = vshll.u32 %v198_v25, %v44_v17 }
  0x19   :  { %v56_v28 = vshll.u32 %v199_v27, %v44_v17  ;;  %v59_v30 = vshll.u32 %v200_v29, %v44_v17  ;;  %vm62_vm1 = vcmp.lt.s32.totalorder %v43_v19, 1  ;;  %vm65_vm2 = vcmp.lt.s32.totalorder %v43_v19, 4 }
  0x1a   :  { %v46_v31 = vshrl.u32 %v196_v21, %v45_v20  ;;  %v48_v32 = vshrl.u32 %v197_v23, %v45_v20  ;;  %v51_v33 = vshrl.u32 %v198_v25, %v45_v20  ;;  %v54_v34 = vshrl.u32 %v199_v27, %v45_v20 }
  0x1b   :  { %v57_v35 = vshrl.u32 %v200_v29, %v45_v20  ;;  %v60_v37 = vshrl.u32 %v201_v36, %v45_v20  ;;  %vm63_vm3 = vcmp.lt.s32.totalorder %v43_v19, 2  ;;  %vm64_vm4 = vcmp.lt.s32.totalorder %v43_v19, 3 }
  0x1c   :  { %v49_v39 = vor.u32 %v48_v32, %v47_v22  ;;  %v52_v40 = vor.u32 %v51_v33, %v50_v24  ;;  %v55_v41 = vor.u32 %v54_v34, %v53_v26  ;;  %v135_v36 = vstv %s257_s0 }
  0x1d   :  { %v58_v42 = vor.u32 %v57_v35, %v56_v28  ;;  %v61_v43 = vor.u32 %v60_v37, %v59_v30 }
  0x1e   :  { %v66_v44 = vsel %vm62_vm1, %v46_v31, %v49_v39  ;;  %v67_v45 = vsel %vm65_vm2, %v55_v41, 2102212464  ;;  %v70_v46 = vsel %vm62_vm1, %v49_v39, %v52_v40  ;;  %v74_v47 = vsel %vm62_vm1, %v52_v40, %v55_v41 }
  0x1f   :  { %v68_v48 = vsel %vm64_vm4, %v52_v40, %v67_v45  ;;  %v71_v49 = vsel %vm65_vm2, %v58_v42, 920167782  ;;  %v75_v50 = vsel %vm65_vm2, %v61_v43, 1326507024 }
  0x20   :  { %v72_v51 = vsel %vm64_vm4, %v55_v41, %v71_v49  ;;  %v76_v52 = vsel %vm64_vm4, %v58_v42, %v75_v50  ;;  %v69_v53 = vsel %vm63_vm3, %v66_v44, %v68_v48 }
  0x21   :  { %v73_v54 = vsel %vm63_vm3, %v70_v46, %v72_v51  ;;  %v77_v55 = vsel %vm63_vm3, %v74_v47, %v76_v52  ;;  %v85_v60 = vmul.u32 %v78_v38, %v69_v53 }
  0x22   :  { %v227_v56 = vmul.u32.u64.low %v78_v38, %v77_v55  ;;  %v228_v57 = vmul.u32.u64.high %v78_v38, %v77_v55, %v227_v56  ;;  %v230_v58 = vmul.u32.u64.low %v78_v38, %v73_v54  ;;  %v231_v59 = vmul.u32.u64.high %v78_v38, %v73_v54, %v230_v58 }
  0x24   :  { %vm87_vm5 = vc.u32 %v228_v57, %v230_v58  ;;  %v88_v61 = vadd.s32 1, %v231_v59  ;;  %v86_v8 = vadd.s32 %v230_v58, %v228_v57 }
  0x26   :  { %v89_v62 = vsel %vm87_vm5, %v88_v61, %v231_v59 }
  0x27   :  { %v90_v63 = vadd.s32 %v89_v62, %v85_v60 }
  0x29   :  { %v91_v0 = vadd.s32 536870912, %v90_v63 }
  0x2b   :  { %v92_v1 = vshrl.u32 %v91_v0, 30 }
  0x2d   :  { %v93_v2 = vshll.u32 %v92_v1, 30  ;;  %v116_v22 = vsub.s32 4, %v92_v1 }
  0x2f   :  { %v94_v3 = vsub.s32 %v90_v63, %v93_v2  ;;  %v117_v25 = vsel %vm32_vm7, %v116_v22, %v92_v1 }
  0x30   :  { %v119_v28 = vsel %vm31_vm8, 0, %v117_v25 }
  0x31   :  { %v96_v4 = vsub.s32 0, %v94_v3  ;;  %v123_v29 = vadd.s32 3, %v119_v28 }
  0x33   :  { %v154_v5 = vmin.u32 %v96_v4, %v94_v3  ;;  %v124_v30 = vand.u32 3, %v123_v29 }
  0x35   :  { %v98_v6 = vclz %v154_v5  ;;  %vm129_vm9 = vcmp.eq.s32.totalorder %v124_v30, 2  ;;  %vm126_vm10 = vcmp.eq.s32.totalorder %v124_v30, 0  ;;  %vm125_vm11 = vcmp.lt.s32.totalorder %v124_v30, 2 }
  0x37   :  { %v155_v7 = vadd.s32 4294967294, %v98_v6 }
  0x39   :  { %vm156_vm6 = vcmp.lt.s32.totalorder %v155_v7, 0 }
  0x3a   :  { %v101_v10 = vsel %vm156_vm6, 0, %v155_v7 }
  0x3b   :  { %v102_v11 = vsub.s32 32, %v101_v10  ;;  %v103_v13 = vshll.u32 %v94_v3, %v101_v10  ;;  %v106_v14 = vsub.s32 4294967266, %v101_v10 }
  0x3d   :  { %v104_v15 = vshrl.u32 %v86_v8, %v102_v11  ;;  %v107_v16 = vadd.s32 127, %v106_v14 }
  0x3f   :  { %v105_v17 = vor.u32 %v104_v15, %v103_v13  ;;  %v108_v18 = vshll.u32 %v107_v16, 23 }
  0x41   :  { %v109_v19 = vor.u32 4788187, %v108_v18  ;;  %v112_v20 = vcvt.s32.f32 %v105_v17 }
  0x43   :  { %v110_v21 = vand.u32 2147483647, %v109_v19 }
  0x45   :  { %v113_v23 = vmul.f32 %v112_v20, %v110_v21 }
  0x47   :  { %v114_v24 = vxor.u32 2147483648, %v113_v23 }
  0x49   :  { %v115_v26 = vsel %vm32_vm7, %v114_v24, %v113_v23 }
  0x4a   :  { %v118_v27 = vsel %vm31_vm8, %v221_v9, %v115_v26 }
  0x4b   :  { %168 = vcosq.f32 %v118_v27 }
  0x4c   :  { %170 = vsinq.f32 %v118_v27 }
  0x55   :  { %v169_v31 = vpop.eup %168 }
  0x56   :  { %v171_v32 = vpop.eup %170  ;;  %v130_v33 = vxor.u32 2147483648, %v169_v31 }
  0x57   :  { %v127_v34 = vxor.u32 2147483648, %v171_v32 }
  0x58   :  { %v131_v12 = vsel %vm129_vm9, %v130_v33, %v171_v32 }
  0x59   :  { %v128_v35 = vsel %vm126_vm10, %v169_v31, %v127_v34 }
  0x5a   :  { %v132_v37 = vsel %vm125_vm11, %v128_v35, %v131_v12 }
  0x5b   :  { %v133_v38 = vsel %vm122_vm12, nan, %v132_v37 }
  0x5c   :  { %v136_v39 = vmul.f32 %v135_v36, %v133_v38 }
  0x5e   :  { %138 = vst.msk [vmem:[#allocation3] sm:$0xff] %vm137_vm13, %v136_v39 }
  0x5f   :  { %183 = shalt.err (!%p180_p4)
}
  0x60   :  { %s184_s17 = scalar_lea.hbm %s259_s2, 128 }
  0x61   :  { %p185_p5 = scmp.ne.s32.totalorder %s259_s2, %s184_s17  ;;  %p188_p6 = scmp.lt.u32.totalorder %s184_s17, %s259_s2 }
  0x63   :  { %p190_p7 = pnand %p188_p6, %p185_p5 }
  0x65   :  { %193 = shalt.err (!%p190_p7)
}
  0x66   :  { %148 = dma.vmem_to_hbm [thread:$0]  %s146_s13, 128, %s259_s2, [#allocation4]  }
  0x67   :  { %194 = dma.done.wait [#allocation4], 128  }
  0x68   :  { %195 = vsyncadd [#allocation4], 4294967168 }
  0x69   :  { %152 = vsyncpa [#allocation4], 1 }

</bundles_post_ra>
